<compile_context>
chip_gen: v5e
topology: v5e:2x2
jax: 0.10.0
libtpu: 0.0.40
codegen_flags: <defaults>
</compile_context>

<pallas_src>
import functools

import jax
import jax.numpy as jnp
from jax.experimental import pallas as pl
from jax.experimental.pallas import tpu as pltpu


def _attention_kernel(x_ref, ctx_ref, w_in_ref, b_in_ref,
                      w_out_c_ref, w_out_x_ref, b_out_ref,
                      out_ref, wts_ref, *, acti: bool):
    x = x_ref[...].astype(jnp.float32)            # (TB, H)
    ctx = ctx_ref[...].astype(jnp.float32)        # (TB, T, H)

    # gamma = linear_in(x)                                         (MXU)
    gamma = jnp.dot(x, w_in_ref[...], preferred_element_type=jnp.float32)
    gamma = gamma + b_in_ref[...]
    if acti:
        gamma = jnp.tanh(gamma)                   # EUP

    # scores[b,t] = sum_h ctx[b,t,h] * gamma[b,h]
    # Per-row M=1 contraction -> VPU broadcast-mul + lane reduce over H (XLU),
    # vectorized over the whole (TB, T) tile instead of TB tiny MXU matmuls.
    s = jnp.sum(ctx * gamma[:, None, :], axis=-1)                  # (TB, T)

    # softmax over T (dim=1 in the PyTorch module), in f32.
    m = jnp.max(s, axis=-1, keepdims=True)
    e = jnp.exp(s - m)                            # EUP
    denom = jnp.sum(e, axis=-1, keepdims=True)
    r = pl.reciprocal(denom, approx=True)         # EUP vrcp
    r = r * (2.0 - denom * r)                     # 1 Newton step -> ~f32 exact
    w = e * r                                                      # (TB, T)

    # c_t[b,h] = sum_t w[b,t] * ctx[b,t,h]
    # Per-row contraction over T -> VPU broadcast-mul + sublane reduce.
    c_t = jnp.sum(ctx * w[:, :, None], axis=1)                     # (TB, H)

    # output = relu(cat([c_t, x], 1) @ W_out.T + b_out)
    #        = relu(c_t @ W_out_c + x @ W_out_x + b_out)            (MXU)
    pre = (jnp.dot(c_t, w_out_c_ref[...], preferred_element_type=jnp.float32)
           + jnp.dot(x, w_out_x_ref[...], preferred_element_type=jnp.float32)
           + b_out_ref[...])
    out_ref[...] = jnp.maximum(pre, 0.0).astype(out_ref.dtype)
    wts_ref[...] = w.astype(wts_ref.dtype)


def _pick_tile_b(B, T, H, itemsize=4, ctx_budget_bytes=8 << 20):
    """Largest multiple-of-8 divisor of B whose double-buffered context block
    fits the budget; fall back to the full (tiny / odd) batch otherwise."""
    if B % 8 == 0:
        for cand in (512, 256, 128, 64, 32, 16, 8):
            if B % cand == 0 and 2 * cand * T * H * itemsize <= ctx_budget_bytes:
                return cand
    return B


def general_attention_pallas(x, context, params, *, acti=False):
    """x: (B, H), context: (B, T, H). Returns (output (B, H), weights (B, T))."""
    B, H = x.shape
    _, T, _ = context.shape

    w_in, b_in, w_out, b_out = (params["w_in"], params["b_in"],
                                params["w_out"], params["b_out"])
    # PyTorch nn.Linear stores weight as (out, in); the kernel consumes (in, out).
    w_in_t = w_in.T                                 # (H, H)
    w_out_t = w_out.T                               # (2H, H)
    w_out_c = w_out_t[:H, :]                        # acts on c_t
    w_out_x = w_out_t[H:, :]                        # acts on x
    b_in_2d = b_in.reshape(1, H)
    b_out_2d = b_out.reshape(1, H)

    itemsize = jnp.dtype(x.dtype).itemsize
    tb = _pick_tile_b(B, T, H, itemsize=itemsize)
    grid = (B // tb,)

    # VMEM budget: double-buffered per-batch blocks + resident weights/biases.
    block_bytes = itemsize * (tb * T * H + 3 * tb * H + tb * T)
    resident_bytes = itemsize * (3 * H * H + 2 * H)
    vmem_limit = int(min(max(4 * (2 * block_bytes + 2 * resident_bytes),
                             16 << 20), 48 << 20))

    flops = 2 * B * (3 * H * H + 2 * T * H)
    transcendentals = B * T + B + (B * H if acti else 0)
    bytes_accessed = itemsize * (B * T * H + 2 * B * H + B * T
                                 + 3 * H * H + 2 * H)

    kernel = functools.partial(_attention_kernel, acti=acti)
    out_shapes = (jax.ShapeDtypeStruct((B, H), x.dtype),
                  jax.ShapeDtypeStruct((B, T), x.dtype))

    return pl.pallas_call(
        kernel,
        out_shape=out_shapes,
        grid_spec=pltpu.PrefetchScalarGridSpec(
            num_scalar_prefetch=0,
            grid=grid,
            in_specs=[
                pl.BlockSpec((tb, H), lambda i: (i, 0)),         # x
                pl.BlockSpec((tb, T, H), lambda i: (i, 0, 0)),   # context
                pl.BlockSpec((H, H), lambda i: (0, 0)),          # w_in    (resident)
                pl.BlockSpec((1, H), lambda i: (0, 0)),          # b_in    (resident)
                pl.BlockSpec((H, H), lambda i: (0, 0)),          # w_out_c (resident)
                pl.BlockSpec((H, H), lambda i: (0, 0)),          # w_out_x (resident)
                pl.BlockSpec((1, H), lambda i: (0, 0)),          # b_out   (resident)
            ],
            out_specs=(pl.BlockSpec((tb, H), lambda i: (i, 0)),   # output
                       pl.BlockSpec((tb, T), lambda i: (i, 0))),  # weights
        ),
        compiler_params=pltpu.CompilerParams(
            dimension_semantics=("parallel",),
            vmem_limit_bytes=vmem_limit),
        cost_estimate=pl.CostEstimate(flops=flops,
                                      transcendentals=transcendentals,
                                      bytes_accessed=bytes_accessed),
    )(x, context, w_in_t, b_in_2d, w_out_c, w_out_x, b_out_2d)


def _reference(x, context, params, *, acti=False):
    w_in, b_in, w_out, b_out = (params["w_in"], params["b_in"],
                                params["w_out"], params["b_out"])
    gamma = x @ w_in.T + b_in
    if acti:
        gamma = jnp.tanh(gamma)
    scores = jnp.einsum("bth,bh->bt", context, gamma)
    w = jax.nn.softmax(scores, axis=1)
    c_t = jnp.einsum("bt,bth->bh", w, context)
    out = jax.nn.relu(jnp.concatenate([c_t, x], axis=1) @ w_out.T + b_out)
    return out, w


def _init_params(key, hidden):
    # Deterministic init mimicking nn.Linear default: U(-1/sqrt(fan_in), ...).
    k1, k2, k3, k4 = jax.random.split(key, 4)
    bnd_in = 1.0 / jnp.sqrt(hidden)
    bnd_out = 1.0 / jnp.sqrt(2 * hidden)
    return {
        "w_in": jax.random.uniform(k1, (hidden, hidden), jnp.float32, -bnd_in, bnd_in),
        "b_in": jax.random.uniform(k2, (hidden,), jnp.float32, -bnd_in, bnd_in),
        "w_out": jax.random.uniform(k3, (hidden, 2 * hidden), jnp.float32, -bnd_out, bnd_out),
        "b_out": jax.random.uniform(k4, (hidden,), jnp.float32, -bnd_out, bnd_out),
    }


if __name__ == "__main__":
    B, T, H = 2, 8, 32
    key = jax.random.PRNGKey(0)
    kx, kc, kp = jax.random.split(key, 3)

    x = jax.random.normal(kx, (B, H), jnp.float32)
    context = jax.random.normal(kc, (B, T, H), jnp.float32)
    params = _init_params(kp, H)

    # Tolerance 1e-4: MXU f32 contractions round slightly differently than the
    # XLA reference einsums; everything is accumulated in f32.
    for acti in (False, True):
        out, wts = general_attention_pallas(x, context, params, acti=acti)
        out, wts = jax.block_until_ready((out, wts))
        ref_out, ref_wts = _reference(x, context, params, acti=acti)
        assert jnp.allclose(out, ref_out, atol=1e-4, rtol=1e-4), f"output mismatch (acti={acti})"
        assert jnp.allclose(wts, ref_wts, atol=1e-4, rtol=1e-4), f"weights mismatch (acti={acti})"

    print("KERNEL_OK")
</pallas_src>

<mosaic_0001>
module attributes {stable_mosaic.version = 11 : i64} {
  func.func @_attention_kernel(%arg0: i32, %arg1: memref<2x32xf32, #tpu.memory_space<vmem>>, %arg2: memref<2x8x32xf32, #tpu.memory_space<vmem>>, %arg3: memref<32x32xf32, #tpu.memory_space<vmem>>, %arg4: memref<1x32xf32, #tpu.memory_space<vmem>>, %arg5: memref<32x32xf32, #tpu.memory_space<vmem>>, %arg6: memref<32x32xf32, #tpu.memory_space<vmem>>, %arg7: memref<1x32xf32, #tpu.memory_space<vmem>>, %arg8: memref<2x32xf32, #tpu.memory_space<vmem>>, %arg9: memref<2x8xf32, #tpu.memory_space<vmem>>) attributes {dimension_semantics = [#tpu.dimension_semantics<parallel>], iteration_bounds = array<i64: 1>, scalar_prefetch = 0 : i64, scratch_operands = 0 : i64, tpu.core_type = #tpu.core_type<tc>, window_params = [{transform_indices = @transform_0, window_bounds = array<i64: 2, 32>}, {transform_indices = @transform_1, window_bounds = array<i64: 2, 8, 32>}, {pipeline_mode = #tpu.pipeline_mode<synchronous>, transform_indices = @transform_2, window_bounds = array<i64: 32, 32>}, {pipeline_mode = #tpu.pipeline_mode<synchronous>, transform_indices = @transform_3, window_bounds = array<i64: 1, 32>}, {pipeline_mode = #tpu.pipeline_mode<synchronous>, transform_indices = @transform_4, window_bounds = array<i64: 32, 32>}, {pipeline_mode = #tpu.pipeline_mode<synchronous>, transform_indices = @transform_5, window_bounds = array<i64: 32, 32>}, {pipeline_mode = #tpu.pipeline_mode<synchronous>, transform_indices = @transform_6, window_bounds = array<i64: 1, 32>}, {transform_indices = @transform_7, window_bounds = array<i64: 2, 32>}, {transform_indices = @transform_8, window_bounds = array<i64: 2, 8>}]} {
    %c0 = arith.constant 0 : index
    %c0_0 = arith.constant 0 : index
    %0 = vector.load %arg1[%c0, %c0_0] : memref<2x32xf32, #tpu.memory_space<vmem>>, vector<2x32xf32>
    %c0_1 = arith.constant 0 : index
    %c0_2 = arith.constant 0 : index
    %c0_3 = arith.constant 0 : index
    %1 = vector.load %arg2[%c0_1, %c0_2, %c0_3] : memref<2x8x32xf32, #tpu.memory_space<vmem>>, vector<2x8x32xf32>
    %c0_4 = arith.constant 0 : index
    %c0_5 = arith.constant 0 : index
    %2 = vector.load %arg3[%c0_4, %c0_5] : memref<32x32xf32, #tpu.memory_space<vmem>>, vector<32x32xf32>
    %cst = arith.constant dense<0.000000e+00> : vector<2x32xf32>
    %3 = tpu.matmul %0, %2, %cst {dimension_numbers = #tpu.dot_dimension_numbers<[1], [0], [0], [1], [0, 0, 1, 1], [], []>} : vector<2x32xf32>, vector<32x32xf32>, vector<2x32xf32> -> vector<2x32xf32>
    %c0_6 = arith.constant 0 : index
    %c0_7 = arith.constant 0 : index
    %4 = vector.load %arg4[%c0_6, %c0_7] : memref<1x32xf32, #tpu.memory_space<vmem>>, vector<1x32xf32>
    %5 = vector.broadcast %4 : vector<1x32xf32> to vector<2x32xf32>
    %6 = arith.addf %3, %5 : vector<2x32xf32>
    %7 = vector.shape_cast %6 : vector<2x32xf32> to vector<2x1x32xf32>
    %8 = vector.broadcast %7 : vector<2x1x32xf32> to vector<2x8x32xf32>
    %9 = arith.mulf %1, %8 : vector<2x8x32xf32>
    %cst_8 = arith.constant dense<0.000000e+00> : vector<2x8xf32>
    %10 = vector.multi_reduction <add>, %9, %cst_8 [2] : vector<2x8x32xf32> to vector<2x8xf32>
    %cst_9 = arith.constant dense<0xFF800000> : vector<2xf32>
    %11 = vector.multi_reduction <maximumf>, %10, %cst_9 [1] : vector<2x8xf32> to vector<2xf32>
    %12 = vector.shape_cast %11 : vector<2xf32> to vector<2x1xf32>
    %13 = vector.broadcast %12 : vector<2x1xf32> to vector<2x8xf32>
    %14 = arith.subf %10, %13 : vector<2x8xf32>
    %15 = math.exp %14 : vector<2x8xf32>
    %cst_10 = arith.constant dense<0.000000e+00> : vector<2xf32>
    %16 = vector.multi_reduction <add>, %15, %cst_10 [1] : vector<2x8xf32> to vector<2xf32>
    %17 = vector.shape_cast %16 : vector<2xf32> to vector<2x1xf32>
    %18 = tpu.reciprocal %17 {approx = true} : vector<2x1xf32> -> vector<2x1xf32>
    %19 = arith.mulf %17, %18 : vector<2x1xf32>
    %cst_11 = arith.constant 2.000000e+00 : f32
    %20 = vector.broadcast %cst_11 : f32 to vector<2x1xf32>
    %21 = arith.subf %20, %19 : vector<2x1xf32>
    %22 = arith.mulf %18, %21 : vector<2x1xf32>
    %23 = vector.broadcast %22 : vector<2x1xf32> to vector<2x8xf32>
    %24 = arith.mulf %15, %23 : vector<2x8xf32>
    %25 = vector.shape_cast %24 : vector<2x8xf32> to vector<2x8x1xf32>
    %26 = vector.broadcast %25 : vector<2x8x1xf32> to vector<2x8x32xf32>
    %27 = arith.mulf %1, %26 : vector<2x8x32xf32>
    %cst_12 = arith.constant dense<0.000000e+00> : vector<2x32xf32>
    %28 = vector.multi_reduction <add>, %27, %cst_12 [1] : vector<2x8x32xf32> to vector<2x32xf32>
    %c0_13 = arith.constant 0 : index
    %c0_14 = arith.constant 0 : index
    %29 = vector.load %arg5[%c0_13, %c0_14] : memref<32x32xf32, #tpu.memory_space<vmem>>, vector<32x32xf32>
    %cst_15 = arith.constant dense<0.000000e+00> : vector<2x32xf32>
    %30 = tpu.matmul %28, %29, %cst_15 {dimension_numbers = #tpu.dot_dimension_numbers<[1], [0], [0], [1], [0, 0, 1, 1], [], []>} : vector<2x32xf32>, vector<32x32xf32>, vector<2x32xf32> -> vector<2x32xf32>
    %c0_16 = arith.constant 0 : index
    %c0_17 = arith.constant 0 : index
    %31 = vector.load %arg6[%c0_16, %c0_17] : memref<32x32xf32, #tpu.memory_space<vmem>>, vector<32x32xf32>
    %cst_18 = arith.constant dense<0.000000e+00> : vector<2x32xf32>
    %32 = tpu.matmul %0, %31, %cst_18 {dimension_numbers = #tpu.dot_dimension_numbers<[1], [0], [0], [1], [0, 0, 1, 1], [], []>} : vector<2x32xf32>, vector<32x32xf32>, vector<2x32xf32> -> vector<2x32xf32>
    %33 = arith.addf %30, %32 : vector<2x32xf32>
    %c0_19 = arith.constant 0 : index
    %c0_20 = arith.constant 0 : index
    %34 = vector.load %arg7[%c0_19, %c0_20] : memref<1x32xf32, #tpu.memory_space<vmem>>, vector<1x32xf32>
    %35 = vector.broadcast %34 : vector<1x32xf32> to vector<2x32xf32>
    %36 = arith.addf %33, %35 : vector<2x32xf32>
    %cst_21 = arith.constant 0.000000e+00 : f32
    %37 = vector.broadcast %cst_21 : f32 to vector<2x32xf32>
    %38 = arith.maximumf %36, %37 : vector<2x32xf32>
    %c0_22 = arith.constant 0 : index
    %c0_23 = arith.constant 0 : index
    %39 = vector.load %arg8[%c0_22, %c0_23] : memref<2x32xf32, #tpu.memory_space<vmem>>, vector<2x32xf32>
    tpu.vector_store %arg8[%c0_22, %c0_23], %38 {strides = array<i32>} : memref<2x32xf32, #tpu.memory_space<vmem>>, vector<2x32xf32>,
    %c0_24 = arith.constant 0 : index
    %c0_25 = arith.constant 0 : index
    %40 = vector.load %arg9[%c0_24, %c0_25] : memref<2x8xf32, #tpu.memory_space<vmem>>, vector<2x8xf32>
    tpu.vector_store %arg9[%c0_24, %c0_25], %24 {strides = array<i32>} : memref<2x8xf32, #tpu.memory_space<vmem>>, vector<2x8xf32>,
    return
  }
  func.func @transform_0(%arg0: i32) -> (i32, i32) {
    %c0_i32 = arith.constant 0 : i32
    %c0_i32_0 = arith.constant 0 : i32
    return %arg0, %c0_i32 : i32, i32
  }
  func.func @transform_1(%arg0: i32) -> (i32, i32, i32) {
    %c0_i32 = arith.constant 0 : i32
    %c0_i32_0 = arith.constant 0 : i32
    %c0_i32_1 = arith.constant 0 : i32
    return %arg0, %c0_i32, %c0_i32_0 : i32, i32, i32
  }
  func.func @transform_2(%arg0: i32) -> (i32, i32) {
    %c0_i32 = arith.constant 0 : i32
    %c0_i32_0 = arith.constant 0 : i32
    %c0_i32_1 = arith.constant 0 : i32
    return %c0_i32, %c0_i32_0 : i32, i32
  }
  func.func @transform_3(%arg0: i32) -> (i32, i32) {
    %c0_i32 = arith.constant 0 : i32
    %c0_i32_0 = arith.constant 0 : i32
    %c0_i32_1 = arith.constant 0 : i32
    return %c0_i32, %c0_i32_0 : i32, i32
  }
  func.func @transform_4(%arg0: i32) -> (i32, i32) {
    %c0_i32 = arith.constant 0 : i32
    %c0_i32_0 = arith.constant 0 : i32
    %c0_i32_1 = arith.constant 0 : i32
    return %c0_i32, %c0_i32_0 : i32, i32
  }
  func.func @transform_5(%arg0: i32) -> (i32, i32) {
    %c0_i32 = arith.constant 0 : i32
    %c0_i32_0 = arith.constant 0 : i32
    %c0_i32_1 = arith.constant 0 : i32
    return %c0_i32, %c0_i32_0 : i32, i32
  }
  func.func @transform_6(%arg0: i32) -> (i32, i32) {
    %c0_i32 = arith.constant 0 : i32
    %c0_i32_0 = arith.constant 0 : i32
    %c0_i32_1 = arith.constant 0 : i32
    return %c0_i32, %c0_i32_0 : i32, i32
  }
  func.func @transform_7(%arg0: i32) -> (i32, i32) {
    %c0_i32 = arith.constant 0 : i32
    %c0_i32_0 = arith.constant 0 : i32
    return %arg0, %c0_i32 : i32, i32
  }
  func.func @transform_8(%arg0: i32) -> (i32, i32) {
    %c0_i32 = arith.constant 0 : i32
    %c0_i32_0 = arith.constant 0 : i32
    return %arg0, %c0_i32 : i32, i32
  }
}

</mosaic_0001>

<bundles_post_ra>
// kernel: tpu_custom_call.1
= control target key start
LH: loop header
LB: loop body
LE: loop exit
PB: predicated region body
PF: predicated region fallthrough
CT: control target
= control target key end

     0   :  { %14 = vsyncpa [#allocation3], 0  ;;  %s650_s0 = inlined_call_operand.hbm [shape: f32[2,32], index: 0, kind: input, shape index: {}]   ;;  %s651_s1 = inlined_call_operand.hbm [shape: f32[2,8,32], index: 1, kind: input, shape index: {}]   ;;  %s652_s2 = inlined_call_operand.hbm [shape: f32[32,32], index: 2, kind: input, shape index: {}]   ;;  %s653_s3 = inlined_call_operand.vmem [shape: f32[1,32], index: 3, kind: input, shape index: {}]   ;;  %s654_s4 = inlined_call_operand.hbm [shape: f32[32,32], index: 4, kind: input, shape index: {}]   ;;  %s655_s5 = inlined_call_operand.hbm [shape: f32[32,32], index: 5, kind: input, shape index: {}]   ;;  %s656_s6 = inlined_call_operand.vmem [shape: f32[1,32], index: 6, kind: input, shape index: {}]   ;;  %s657_s7 = inlined_call_operand.hbm [shape: f32[2,32], index: 7, kind: output, shape index: {0}]   ;;  %s658_s8 = inlined_call_operand.hbm [shape: f32[2,8], index: 8, kind: output, shape index: {1}]  }
   0x1   :  { %15 = vsyncpa [#allocation6], 0 }
   0x2   :  { %16 = vsyncpa [#allocation9], 0 }
   0x3   :  { %17 = vsyncpa [#allocation4], 0  ;;  %s34_s29 = sshll.u32 %s651_s1, 4  ;;  %s35_s29 = int_to_ptr.hbm [resolvable:$true] %s34_s29 }
   0x4   :  { %18 = vsyncpa [#allocation13], 0  ;;  %s534_s30 = smov [#allocation5]   ;;  %s62_s12 = sshll.u32 %s654_s4, 4  ;;  %s63_s12 = int_to_ptr.hbm [resolvable:$true] %s62_s12 }
   0x5   :  { %s36_s9 = sshll.u32 %s534_s30, 4  ;;  %s535_s13 = smov 128   ;;  %s37_s9 = int_to_ptr.vmem [resolvable:$true] %s36_s9 }
   0x6   :  { %s536_s14 = smov 8   ;;  %s537_s15 = smov [#allocation8]  }
   0x7   :  { %42 = dma.hbm_to_vmem [thread:$0]  %s35_s29, 256, %s37_s9, [#allocation6], %s535_s13, %s535_s13, %s536_s14  }
   0x8   :  { %s64_s16 = sshll.u32 %s537_s15, 4  ;;  %s24_s19 = sshll.u32 %s650_s0, 4  ;;  %s65_s16 = int_to_ptr.vmem [resolvable:$true] %s64_s16  ;;  %s25_s19 = int_to_ptr.hbm [resolvable:$true] %s24_s19 }
   0x9   :  { %70 = dma.hbm_to_vmem [thread:$0]  %s63_s12, 512, %s65_s16, [#allocation9], %s535_s13, %s535_s13, %s536_s14  }
   0xa   :  { %s47_s21 = sshll.u32 %s652_s2, 4  ;;  %s538_s22 = smov [#allocation2]   ;;  %s48_s21 = int_to_ptr.hbm [resolvable:$true] %s47_s21 }
   0xb   :  { %s26_s23 = sshll.u32 %s538_s22, 4  ;;  %s539_s4 = smov [#allocation7]   ;;  %s27_s23 = int_to_ptr.vmem [resolvable:$true] %s26_s23 }
   0xc   :  { %29 = dma.hbm_to_vmem [thread:$0]  %s25_s19, 32, %s27_s23, [#allocation3]  }
   0xd   :  { %s49_s24 = sshll.u32 %s539_s4, 4  ;;  %s75_s27 = sshll.u32 %s655_s5, 4  ;;  %s50_s24 = int_to_ptr.vmem [resolvable:$true] %s49_s24  ;;  %s76_s27 = int_to_ptr.hbm [resolvable:$true] %s75_s27 }
   0xe   :  { %55 = dma.hbm_to_vmem [thread:$0]  %s48_s21, 512, %s50_s24, [#allocation6], %s535_s13, %s535_s13, %s536_s14  }
   0xf   :  { %s540_s0 = smov [#allocation10]  }
  0x10   :  { %s77_s28 = sshll.u32 %s540_s0, 4  ;;  %s78_s28 = int_to_ptr.vmem [resolvable:$true] %s77_s28 }
  0x11   :  { %83 = dma.hbm_to_vmem [thread:$0]  %s76_s27, 512, %s78_s28, [#allocation9], %s535_s13, %s535_s13, %s536_s14  }
  0x12   :  { %524 = dma.done.wait [#allocation3], 32  }
  0x13   :  { %525 = vsyncadd [#allocation3], 4294967264 }
  0x14   :  { %526 = dma.done.wait [#allocation6], 768  }
  0x15   :  { %527 = vsyncadd [#allocation6], 4294966528 }
  0x16   :  { %528 = dma.done.wait [#allocation9], 1024  }
  0x17   :  { %529 = vsyncadd [#allocation9], 4294966272  ;;  %v112_v0 = vld [vmem:[#allocation7 + $0x18] sm:$0xff]  ;;  %v111_v1 = vld [vmem:[#allocation7 + $0x10] sm:$0xff]  ;;  %vm117_vm0 = vcmask 261120   ;;  %v157_v18 = vlaneseq  ;;  %vm161_vm1 = vcmask 1041409  }
  0x18   :  { %133 = vmatpush.msra.mxu0 %v112_v0  ;;  %v110_v2 = vld [vmem:[#allocation7 + $0x8] sm:$0xff]  ;;  %v109_v3 = vld [vmem:[#allocation7] sm:$0xff]  ;;  %v611_v8 = vld [vmem:[#allocation5] sm:$0xff]  ;;  %vm164_vm2 = vcmask 58368   ;;  %v541_v25 = vmov 0   ;;  %s315_s10 = sshll.u32 %s658_s8, 4  ;;  %s316_s10 = int_to_ptr.hbm [resolvable:$true] %s315_s10 }
  0x19   :  { %v604_v4 = vld [vmem:[#allocation2] sm:$0x3]  ;;  %v615_v14 = vld [vmem:[#allocation5 + $0x8] sm:$0xff]  ;;  %v619_v19 = vand.u32 127, %v157_v18  ;;  %346 = vset.pattern.permute.xlu2 %v541_v25  ;;  %345 = vset.pattern.permute.xlu1 %v541_v25  ;;  %v233_v51 = vld [vmem:[#allocation8 + $0x10] sm:$0xff]  ;;  %s543_s13 = smov [#allocation11]  }
  0x1a   :  { %134 = vmatpush.msra.mxu0 %v111_v1  ;;  %v348_v5 = vld [vmem:[%s653_s3] ss:$0 sm:$0xff]  ;;  %347 = vset.pattern.permute.xlu0 %v541_v25  ;;  %v234_v50 = vld [vmem:[#allocation8 + $0x18] sm:$0xff]  ;;  %v231_v54 = vld [vmem:[#allocation8] sm:$0xff]  ;;  %s542_s3 = smov [#allocation12]   ;;  %s302_s14 = sshll.u32 %s543_s13, 4  ;;  %s303_s14 = int_to_ptr.vmem [resolvable:$true] %s302_s14 }
  0x1b   :  { %276 = vmatpush.msra.mxu2 %v234_v50  ;;  %v232_v52 = vld [vmem:[#allocation8 + $0x8] sm:$0xff]  ;;  %v238_v53 = vld [vmem:[#allocation10 + $0x18] sm:$0xff]  ;;  %v237_v55 = vld [vmem:[#allocation10 + $0x10] sm:$0xff]  ;;  %s313_s29 = sshll.u32 %s542_s3, 4  ;;  %s304_s17 = sshll.u32 %s657_s7, 4  ;;  %vm290_vm3 = vcmask 254976   ;;  %s314_s29 = int_to_ptr.vmem [resolvable:$true] %s313_s29  ;;  %s305_s17 = int_to_ptr.hbm [resolvable:$true] %s304_s17 }
  0x1c   :  { %135 = vmatpush.msra.mxu0 %v110_v2  ;;  %251 = vmatpush.msra.mxu1 %v238_v53  ;;  %v236_v56 = vld [vmem:[#allocation10 + $0x8] sm:$0xff]  ;;  %v235_v57 = vld [vmem:[#allocation10] sm:$0xff] }
  0x1d   :  { %277 = vmatpush.msra.mxu2 %v233_v51 }
  0x1e   :  { %136 = vmatpush.msra.mxu0 %v109_v3  ;;  %252 = vmatpush.msra.mxu1 %v237_v55 }
  0x1f   :  { %332 = vmatmul.msk.f32.vlgmr.msra.gmra.mxu0 %vm117_vm0, %v604_v4  ;;  %278 = vmatpush.msra.mxu2 %v232_v52 }
  0x20   :  { %253 = vmatpush.msra.mxu1 %v236_v56 }
  0x21   :  { %279 = vmatpush.msra.mxu2 %v231_v54 }
  0x22   :  { %254 = vmatpush.msra.mxu1 %v235_v57 }
  0x23   :  { %333 = vmatmul.msk.f32.vlgmr.msra.gmra.mxu1 %vm117_vm0, %v604_v4 }
  0x9c   :  { %v138_v6 = vpop.f32.mrf.mxu0 }
  0x9d   :  { %v139_v7 = vadd.f32 %v348_v5, %v138_v6 }
  0x9f   :  { %v142_v9 = vrot.slane %v139_v7, 1  ;;  %v143_v10 = vperm.slane %v139_v7, 0 }
  0xa1   :  { %v147_v11 = vmul.f32 %v143_v10, %v611_v8  ;;  %v144_v12 = vperm.slane %v142_v9, 0 }
  0xa3   :  { %v149_v13 = vsel %vm117_vm0, %v147_v11, 0.0  ;;  %v148_v15 = vmul.f32 %v144_v12, %v615_v14 }
  0xa4   :  { %150 = vadd.xlane.f32.xlu0 %v149_v13 }
  0xa5   :  { %v152_v16 = vsel %vm117_vm0, %v148_v15, 0.0 }
  0xac   :  { %153 = vadd.xlane.f32.xlu0 %v152_v16  ;;  %v256_v16 = vpop.f32.mrf.mxu1 }
 0x117   :  { %v151_v17 = vpop.xlane.xlu0 %150 }
 0x118   :  { %v159_v21 = vperm.slane %v151_v17, %v619_v19 }
 0x11f   :  { %v154_v20 = vpop.xlane.xlu0 %153 }
 0x120   :  { %v160_v22 = vperm.slane %v154_v20, %v619_v19 }
 0x122   :  { %v162_v23 = vsel %vm161_vm1, %v160_v22, %v159_v21 }
 0x123   :  { %v165_v24 = vsel %vm164_vm2, %v162_v23, -inf }
 0x124   :  { %166 = vmax.xlane.f32.xlu1 %v165_v24 }
 0x197   :  { %v167_v26 = vpop.xlane.xlu1 %166 }
 0x198   :  { %v169_v27 = vperm.slane %v167_v26, 0  ;;  %v170_v28 = vperm.slane %v167_v26, 1 }
 0x19a   :  { %v173_v29 = vsub.f32 %v151_v17, %v169_v27  ;;  %v174_v30 = vsub.f32 %v154_v20, %v170_v28  ;;  %v349_v17 = vld [vmem:[%s656_s6] ss:$0 sm:$0xff] }
 0x19c   :  { %v175_v31 = vmul.f32 1.442695, %v173_v29  ;;  %v177_v32 = vmul.f32 1.442695, %v174_v30 }
 0x19e   :  { %350 = vpow2.f32 %v175_v31 }
 0x19f   :  { %352 = vpow2.f32 %v177_v32 }
 0x1a4   :  { %v351_v33 = vpop.eup %350 }
 0x1a5   :  { %v353_v34 = vpop.eup %352  ;;  %182 = vperm.xlu1 %345, %v351_v33  }
 0x1a6   :  { %185 = vperm.xlu2 %346, %v353_v34  }
 0x200   :  { %v186_v35 = vpop.permute.xlu2 %185 }
 0x201   :  { %v188_v37 = vperm.slane %v186_v35, %v619_v19 }
 0x217   :  { %v183_v36 = vpop.permute.xlu1 %182 }
 0x218   :  { %v187_v38 = vperm.slane %v183_v36, %v619_v19 }
 0x21a   :  { %v189_v39 = vsel %vm161_vm1, %v188_v37, %v187_v38 }
 0x21b   :  { %v191_v40 = vsel %vm164_vm2, %v189_v39, 0.0 }
 0x21c   :  { %192 = vadd.xlane.f32.xlu2 %v191_v40 }
 0x28f   :  { %v193_v41 = vpop.xlane.xlu2 %192 }
 0x290   :  { %354 = vrcp.f32 %v193_v41 }
 0x296   :  { %v355_v42 = vpop.eup %354 }
 0x297   :  { %v195_v43 = vmul.f32 %v355_v42, %v193_v41 }
 0x299   :  { %v196_v44 = vsub.f32 2.0, %v195_v43 }
 0x29b   :  { %v197_v45 = vmul.f32 %v355_v42, %v196_v44 }
 0x29d   :  { %v199_v46 = vperm.slane %v197_v45, 0  ;;  %v200_v47 = vperm.slane %v197_v45, 1 }
 0x29f   :  { %v204_v48 = vmul.f32 %v353_v34, %v200_v47  ;;  %v203_v49 = vmul.f32 %v351_v33, %v199_v46 }
 0x2a1   :  { %212 = vperm.xlu1 %345, %v204_v48   ;;  %207 = vperm.xlu0 %347, %v203_v49  }
 0x313   :  { %v213_v58 = vpop.permute.xlu1 %212  ;;  %v208_v59 = vpop.permute.xlu0 %207 }
 0x314   :  { %v216_v60 = vmul.f32 %v213_v58, %v615_v14  ;;  %v293_v61 = vperm.slane %v213_v58, %v619_v19  ;;  %v215_v62 = vmul.f32 %v208_v59, %v611_v8  ;;  %v292_v63 = vperm.slane %v208_v59, %v619_v19 }
 0x316   :  { %v224_v0 = vsel %vm117_vm0, %v216_v60, 0.0  ;;  %v217_v1 = vsel %vm117_vm0, %v215_v62, 0.0  ;;  %v294_v2 = vsel %vm161_vm1, %v293_v61, %v292_v63 }
 0x317   :  { %v225_v3 = vrot.slane %v224_v0, 4  ;;  %v218_v5 = vrot.slane %v217_v1, 4  ;;  %296 = vst.msk [vmem:[#allocation12] sm:$0x3] %vm164_vm2, %v294_v2 }
 0x318   :  { %318 = dma.vmem_to_hbm [thread:$0]  %s314_s29, 32, %s316_s10, [#allocation13]  }
 0x319   :  { %v226_v4 = vadd.f32 %v225_v3, %v224_v0  ;;  %v219_v6 = vadd.f32 %v218_v5, %v217_v1 }
 0x31b   :  { %v227_v7 = vrot.slane %v226_v4, 2  ;;  %v220_v9 = vrot.slane %v219_v6, 2 }
 0x31d   :  { %v228_v10 = vadd.f32 %v227_v7, %v226_v4  ;;  %v221_v11 = vadd.f32 %v220_v9, %v219_v6 }
 0x31f   :  { %v229_v12 = vrot.slane %v228_v10, 1  ;;  %v222_v8 = vrot.slane %v221_v11, 1 }
 0x321   :  { %v223_v13 = vadd.f32 %v222_v8, %v221_v11  ;;  %v230_v14 = vadd.f32 %v229_v12, %v228_v10 }
 0x323   :  { %v261_v15 = vsel %vm161_vm1, %v230_v14, %v223_v13 }
 0x324   :  { %334 = vmatmul.msk.f32.vlgmr.msra.gmra.mxu2 %vm117_vm0, %v261_v15 }
 0x3a7   :  { %v281_v18 = vpop.f32.mrf.mxu2 }
 0x3a8   :  { %v282_v19 = vadd.f32 %v281_v18, %v256_v16 }
 0x3aa   :  { %v288_v20 = vadd.f32 %v349_v17, %v282_v19 }
 0x3ac   :  { %v289_v21 = vmax.f32 %v288_v20, 0.0 }
 0x3ae   :  { %291 = vst.msk [vmem:[#allocation11] sm:$0x3] %vm290_vm3, %v289_v21 }
 0x3af   :  { %307 = dma.vmem_to_hbm [thread:$0]  %s303_s14, 32, %s305_s17, [#allocation4]  }
 0x3b0   :  { %530 = dma.done.wait [#allocation4], 32  }
 0x3b1   :  { %531 = vsyncadd [#allocation4], 4294967264 }
 0x3b2   :  { %532 = dma.done.wait [#allocation13], 32  }
 0x3b3   :  { %533 = vsyncadd [#allocation13], 4294967264 }
 0x3b4   :  { %327 = vsyncpa [#allocation3], 1 }
 0x3b5   :  { %328 = vsyncpa [#allocation6], 1 }
 0x3b6   :  { %329 = vsyncpa [#allocation9], 1 }
 0x3b7   :  { %330 = vsyncpa [#allocation4], 1 }
 0x3b8   :  { %331 = vsyncpa [#allocation13], 1 }

</bundles_post_ra>
